<compile_context>
chip_gen: v6e
topology: v6e:2x2x1
jax: 0.10.0
libtpu: 0.0.40
codegen_flags: <defaults>
</compile_context>

<pallas_src>
import jax
import jax.numpy as jnp
from jax.experimental import pallas as pl
from jax.experimental.pallas import tpu as pltpu


def _round_up(x, m):
    return ((x + m - 1) // m) * m


def _largest_tile(padded_dim, unit, cap):
    """Largest multiple of `unit` that divides `padded_dim` and is <= cap."""
    m = padded_dim // unit
    cap_units = max(1, cap // unit)
    best = 1
    for d in range(1, min(m, cap_units) + 1):
        if m % d == 0:
            best = d
    return best * unit


def _make_kernel(resident_inputs, tk, use_acc):
    """Builds the per-tile kernel.

    LHS tile (TB, TK): either sliced (128-aligned) from a VMEM-resident
    (TB, D_pad) inputs block, or a streamed (TB, TK) block.
    RHS tile (TN, TK): exemplar block. Contraction is over the feature (lane)
    dim of both tiles, i.e. out += inputs_tile @ em_tile.T on the MXU.
    """

    def _lhs(inp_ref):
        if resident_inputs:
            start = pl.multiple_of(pl.program_id(2) * tk, 128)
            return inp_ref[:, pl.ds(start, tk)]
        return inp_ref[...]

    if use_acc:
        def kernel(inp_ref, em_ref, out_ref, acc_ref):
            k = pl.program_id(2)

            @pl.when(k == 0)
            def _init():
                acc_ref[...] = jnp.zeros_like(acc_ref)

            acc_ref[...] += jax.lax.dot_general(
                _lhs(inp_ref), em_ref[...],
                dimension_numbers=(((1,), (1,)), ((), ())),
                preferred_element_type=jnp.float32)

            @pl.when(k == pl.num_programs(2) - 1)
            def _store():
                out_ref[...] = acc_ref[...].astype(out_ref.dtype)
    else:
        # f32 output: accumulate directly into the resident output block
        # (it is already K-resident because the out index_map ignores k).
        def kernel(inp_ref, em_ref, out_ref):
            k = pl.program_id(2)

            @pl.when(k == 0)
            def _init():
                out_ref[...] = jnp.zeros_like(out_ref)

            out_ref[...] += jax.lax.dot_general(
                _lhs(inp_ref), em_ref[...],
                dimension_numbers=(((1,), (1,)), ((), ())),
                preferred_element_type=jnp.float32)

    return kernel


def _matmul_padded(inputs_p, em_p, out_dtype, tb, tn, tk, resident_inputs,
                   n_leading, vmem_limit_bytes):
    """out[B_pad, N_pad] = inputs_p @ em_p.T on padded, tile-aligned operands."""
    B_pad, D_pad = inputs_p.shape
    N_pad = em_p.shape[0]
    grid_b, grid_n, grid_k = B_pad // tb, N_pad // tn, D_pad // tk

    if n_leading:
        # Single B tile: lead with the (usually much larger) N-tile axis so
        # the first "parallel" dimension has real extent (v7x megacore).
        grid = (grid_n, grid_b, grid_k)
        inp_map = ((lambda j, i, k: (i, 0)) if resident_inputs
                   else (lambda j, i, k: (i, k)))
        em_map = lambda j, i, k: (j, k)
        out_map = lambda j, i, k: (i, j)
    else:
        grid = (grid_b, grid_n, grid_k)
        inp_map = ((lambda i, j, k: (i, 0)) if resident_inputs
                   else (lambda i, j, k: (i, k)))
        em_map = lambda i, j, k: (j, k)
        out_map = lambda i, j, k: (i, j)

    inp_block = (tb, D_pad) if resident_inputs else (tb, tk)
    use_acc = jnp.dtype(out_dtype) != jnp.dtype(jnp.float32)
    scratch = (pltpu.VMEM((tb, tn), jnp.float32),) if use_acc else ()

    in_isz = jnp.dtype(inputs_p.dtype).itemsize
    em_isz = jnp.dtype(em_p.dtype).itemsize
    out_isz = jnp.dtype(out_dtype).itemsize

    # Honest HBM-traffic hint: inputs re-stream once per N tile unless they
    # are VMEM-resident; em re-streams once per B tile.
    inputs_streams = 1 if resident_inputs else grid_n
    cost = pl.CostEstimate(
        flops=2 * B_pad * N_pad * D_pad,
        transcendentals=0,
        bytes_accessed=int(B_pad * D_pad * in_isz * inputs_streams
                           + N_pad * D_pad * em_isz * grid_b
                           + B_pad * N_pad * out_isz),
    )

    # Double-buffered VMEM footprint; raise the scoped limit only if needed
    # (keeps the same code valid on v5e/v6e/v7x default limits).
    budget = (2 * tb * (D_pad if resident_inputs else tk) * in_isz
              + 2 * tn * tk * em_isz
              + 2 * tb * tn * out_isz
              + (tb * tn * 4 if use_acc else 0))
    if vmem_limit_bytes is None and budget > (14 << 20):
        vmem_limit_bytes = int(min(budget + (4 << 20), 48 << 20))

    return pl.pallas_call(
        _make_kernel(resident_inputs, tk, use_acc),
        out_shape=jax.ShapeDtypeStruct((B_pad, N_pad), out_dtype),
        grid_spec=pltpu.PrefetchScalarGridSpec(
            num_scalar_prefetch=0,
            grid=grid,
            in_specs=[
                pl.BlockSpec(inp_block, inp_map),
                # NOTE: if profiling shows exposed DMA on the streamed em
                # operand, add pipeline_mode=pl.Buffered(3) to this BlockSpec.
                pl.BlockSpec((tn, tk), em_map),
            ],
            out_specs=pl.BlockSpec((tb, tn), out_map),
            scratch_shapes=scratch,
        ),
        compiler_params=pltpu.CompilerParams(
            dimension_semantics=("parallel", "parallel", "arbitrary"),
            vmem_limit_bytes=vmem_limit_bytes,
        ),
        cost_estimate=cost,
    )(inputs_p, em_p)


class ExemplarMemory:
    """JAX/Pallas port of the PyTorch ExemplarMemory module (forward pass).

    forward(inputs, targets) = inputs @ em.T.  `targets` / `alpha` only drive
    the backward-time in-place bank update, which is not a forward-pass op.
    The persistent bank is padded once at construction; forward never copies
    it again.
    """

    def __init__(self, em, alpha=0.01, *, block_b=512, block_n=1024,
                 block_k=1024, max_resident_inputs_bytes=8 << 20,
                 out_dtype=None, vmem_limit_bytes=None):
        self.alpha = alpha
        self.num_exemplars, self.feature_dim = em.shape
        n_pad = _round_up(self.num_exemplars, 128)
        d_pad = _round_up(self.feature_dim, 128)
        if (n_pad, d_pad) != (self.num_exemplars, self.feature_dim):
            em = jnp.zeros((n_pad, d_pad), em.dtype).at[
                :self.num_exemplars, :self.feature_dim].set(em)
        self.em_padded = em
        self.block_b = block_b
        self.block_n = block_n
        self.block_k = block_k
        self.max_resident_inputs_bytes = max_resident_inputs_bytes
        self.out_dtype = out_dtype
        self.vmem_limit_bytes = vmem_limit_bytes

    def __call__(self, inputs, targets=None):
        return self.forward(inputs, targets)

    def forward(self, inputs, targets=None):
        del targets  # forward-only
        # TODO(synk): the PyTorch module updates the bank in backward
        # (em[y] = alpha*em[y] + (1-alpha)*x, renormalised). A Pallas version
        # would need scalar-prefetched targets + input_output_aliases on em;
        # it is an autograd side effect, not part of this forward pass.
        B, D = inputs.shape
        assert D == self.feature_dim, "feature dims must match"
        N_pad, D_pad = self.em_padded.shape

        out_dtype = self.out_dtype or jnp.result_type(inputs.dtype,
                                                      self.em_padded.dtype)
        in_isz = jnp.dtype(inputs.dtype).itemsize
        sub = 8 * max(1, 4 // in_isz)          # sublane packing multiple

        tb = min(_round_up(self.block_b, sub), _round_up(B, sub))
        b_pad = _round_up(B, tb)
        tn = _largest_tile(N_pad, 128, self.block_n)
        tk = _largest_tile(D_pad, 128, self.block_k)

        # Activations are small; padding them per call is cheap (unlike the
        # bank). Zero feature columns contribute nothing to the dot product.
        if (b_pad, D_pad) != (B, D):
            inputs_p = jnp.zeros((b_pad, D_pad), inputs.dtype).at[:B, :D].set(inputs)
        else:
            inputs_p = inputs

        resident = 2 * tb * D_pad * in_isz <= self.max_resident_inputs_bytes
        n_leading = (b_pad // tb) == 1

        out_p = _matmul_padded(inputs_p, self.em_padded, out_dtype, tb, tn, tk,
                               resident, n_leading, self.vmem_limit_bytes)
        return out_p[:B, :self.num_exemplars]


def exemplar_memory_forward(inputs, targets, em, alpha=0.01, **kwargs):
    """Functional one-shot API (parity with ExemplarMemoryFunction.forward).

    For repeated calls against a persistent bank, construct ExemplarMemory
    once so the bank is padded a single time.
    """
    return ExemplarMemory(em, alpha, **kwargs)(inputs, targets)


if __name__ == "__main__":
    root = jax.random.PRNGKey(0)
    ks = jax.random.split(root, 11)

    def check(out, ref, atol, rtol, shape):
        out = jax.block_until_ready(out)
        assert out.shape == shape, (out.shape, shape)
        assert jnp.allclose(jnp.asarray(out, jnp.float32),
                            jnp.asarray(ref, jnp.float32),
                            atol=atol, rtol=rtol)

    # Case 1: small shapes, single tile, f32 direct-accumulate path.
    B, D, N = 8, 32, 64
    x = jax.random.normal(ks[0], (B, D), jnp.float32)
    em = jax.random.normal(ks[1], (N, D), jnp.float32)
    em = em / jnp.linalg.norm(em, axis=1, keepdims=True)
    t = jax.random.randint(ks[2], (B,), 0, N, dtype=jnp.int32)
    mem = ExemplarMemory(em, alpha=0.01)
    check(mem(x, t), x @ em.T, 1e-5, 1e-5, (B, N))

    # Case 2: non-divisible shapes (padding / tail path), functional API.
    B2, D2, N2 = 5, 200, 300
    x2 = jax.random.normal(ks[3], (B2, D2), jnp.float32)
    em2 = jax.random.normal(ks[4], (N2, D2), jnp.float32)
    em2 = em2 / jnp.linalg.norm(em2, axis=1, keepdims=True)
    t2 = jnp.zeros((B2,), jnp.int32)
    check(exemplar_memory_forward(x2, t2, em2), x2 @ em2.T, 1e-4, 1e-4, (B2, N2))

    # Case 3: multi-tile grid (several N- and K-tiles), resident inputs with
    # in-kernel 128-aligned K slicing, N-leading grid order (single B tile).
    B3, D3, N3 = 16, 640, 1280
    x3 = jax.random.normal(ks[5], (B3, D3), jnp.float32)
    em3 = jax.random.normal(ks[6], (N3, D3), jnp.float32)
    em3 = em3 / jnp.linalg.norm(em3, axis=1, keepdims=True)
    mem3 = ExemplarMemory(em3, block_n=256, block_k=128)
    check(mem3(x3), x3 @ em3.T, 1e-4, 1e-4, (B3, N3))

    # Case 4: several B tiles + streamed (non-resident) inputs blocks,
    # B-leading grid order.
    B4, D4, N4 = 24, 256, 512
    x4 = jax.random.normal(ks[7], (B4, D4), jnp.float32)
    em4 = jax.random.normal(ks[8], (N4, D4), jnp.float32)
    em4 = em4 / jnp.linalg.norm(em4, axis=1, keepdims=True)
    mem4 = ExemplarMemory(em4, block_b=8, block_n=256, block_k=128,
                          max_resident_inputs_bytes=0)
    check(mem4(x4), x4 @ em4.T, 1e-4, 1e-4, (B4, N4))

    # Case 5: bf16 bank + bf16 activations (HBM-bandwidth saving); f32 MXU
    # accumulation via the VMEM acc-scratch variant, bf16 output.
    B5, D5, N5 = 12, 160, 384
    x5 = jax.random.normal(ks[9], (B5, D5), jnp.float32).astype(jnp.bfloat16)
    em5 = jax.random.normal(ks[10], (N5, D5), jnp.float32)
    em5 = (em5 / jnp.linalg.norm(em5, axis=1, keepdims=True)).astype(jnp.bfloat16)
    mem5 = ExemplarMemory(em5)
    ref5 = x5.astype(jnp.float32) @ em5.astype(jnp.float32).T
    check(mem5(x5), ref5, 5e-2, 2e-2, (B5, N5))

    print("KERNEL_OK")
</pallas_src>

<mosaic_0001>
module attributes {stable_mosaic.version = 11 : i64} {
  func.func @kernel(%arg0: i32, %arg1: i32, %arg2: i32, %arg3: memref<8x128xf32, #tpu.memory_space<vmem>>, %arg4: memref<128x128xf32, #tpu.memory_space<vmem>>, %arg5: memref<8x128xf32, #tpu.memory_space<vmem>>) attributes {dimension_semantics = [#tpu.dimension_semantics<parallel>, #tpu.dimension_semantics<parallel>, #tpu.dimension_semantics<arbitrary>], iteration_bounds = array<i64: 1, 1, 1>, scalar_prefetch = 0 : i64, scratch_operands = 0 : i64, tpu.core_type = #tpu.core_type<tc>, window_params = [{transform_indices = @transform_0, window_bounds = array<i64: 8, 128>}, {transform_indices = @transform_1, window_bounds = array<i64: 128, 128>}, {transform_indices = @transform_2, window_bounds = array<i64: 8, 128>}]} {
    %c0_i32 = arith.constant 0 : i32
    %0 = arith.cmpi eq, %arg2, %c0_i32 : i32
    %1 = arith.extui %0 : i1 to i32
    %c0_i32_0 = arith.constant 0 : i32
    %2 = arith.cmpi ne, %1, %c0_i32_0 : i32
    scf.if %2 {
      %cst_7 = arith.constant 0.000000e+00 : f32
      %12 = vector.broadcast %cst_7 : f32 to vector<8x128xf32>
      %c0_8 = arith.constant 0 : index
      %c0_9 = arith.constant 0 : index
      %13 = vector.load %arg5[%c0_8, %c0_9] : memref<8x128xf32, #tpu.memory_space<vmem>>, vector<8x128xf32>
      tpu.vector_store %arg5[%c0_8, %c0_9], %12 {strides = array<i32>} : memref<8x128xf32, #tpu.memory_space<vmem>>, vector<8x128xf32>,
    } else {
    }
    %c0 = arith.constant 0 : index
    %c0_1 = arith.constant 0 : index
    %3 = vector.load %arg5[%c0, %c0_1] : memref<8x128xf32, #tpu.memory_space<vmem>>, vector<8x128xf32>
    %c128_i32 = arith.constant 128 : i32
    %4 = arith.muli %arg2, %c128_i32 : i32
    %5 = tpu.assume_multiple %4, 128 : i32
    %c0_2 = arith.constant 0 : index
    %6 = arith.index_cast %5 : i32 to index
    %7 = vector.load %arg3[%c0_2, %6] : memref<8x128xf32, #tpu.memory_space<vmem>>, vector<8x128xf32>
    %c0_3 = arith.constant 0 : index
    %c0_4 = arith.constant 0 : index
    %8 = vector.load %arg4[%c0_3, %c0_4] : memref<128x128xf32, #tpu.memory_space<vmem>>, vector<128x128xf32>
    %cst = arith.constant dense<0.000000e+00> : vector<8x128xf32>
    %9 = tpu.matmul %7, %8, %cst {dimension_numbers = #tpu.dot_dimension_numbers<[1], [1], [0], [0], [0, 0, 1, 0], [], []>} : vector<8x128xf32>, vector<128x128xf32>, vector<8x128xf32> -> vector<8x128xf32>
    %10 = arith.addf %3, %9 : vector<8x128xf32>
    %c0_5 = arith.constant 0 : index
    %c0_6 = arith.constant 0 : index
    %11 = vector.load %arg5[%c0_5, %c0_6] : memref<8x128xf32, #tpu.memory_space<vmem>>, vector<8x128xf32>
    tpu.vector_store %arg5[%c0_5, %c0_6], %10 {strides = array<i32>} : memref<8x128xf32, #tpu.memory_space<vmem>>, vector<8x128xf32>,
    return
  }
  func.func @transform_0(%arg0: i32, %arg1: i32, %arg2: i32) -> (i32, i32) {
    %c0_i32 = arith.constant 0 : i32
    %c0_i32_0 = arith.constant 0 : i32
    return %arg1, %c0_i32 : i32, i32
  }
  func.func @transform_1(%arg0: i32, %arg1: i32, %arg2: i32) -> (i32, i32) {
    %c0_i32 = arith.constant 0 : i32
    return %arg0, %arg2 : i32, i32
  }
  func.func @transform_2(%arg0: i32, %arg1: i32, %arg2: i32) -> (i32, i32) {
    %c0_i32 = arith.constant 0 : i32
    return %arg1, %arg0 : i32, i32
  }
}

</mosaic_0001>

<bundles_post_ra>
// kernel: tpu_custom_call.1
= control target key start
LH: loop header
LB: loop body
LE: loop exit
PB: predicated region body
PF: predicated region fallthrough
CT: control target
= control target key end

     0   :  { %7 = vsyncpa [#allocation3], 0  ;;  %s310_s0 = inlined_call_operand.hbm [shape: f32[8,128], index: 0, kind: input, shape index: {}]   ;;  %s311_s1 = inlined_call_operand.hbm [shape: f32[128,128], index: 1, kind: input, shape index: {}]   ;;  %s312_s2 = inlined_call_operand.hbm [shape: f32[8,128], index: 2, kind: output, shape index: {}]  }
   0x1   :  { %8 = vsyncpa [#allocation6], 0 }
   0x2   :  { %9 = vsyncpa [#allocation4], 0  ;;  %s279_s9 = smov [#allocation2]   ;;  %s280_s11 = smov [#allocation5]  }
   0x3   :  { %s16_s10 = sshll.u32 %s279_s9, 4  ;;  %s25_s12 = sshll.u32 %s280_s11, 4  ;;  %s17_s10 = int_to_ptr.vmem [resolvable:$true] %s16_s10  ;;  %s26_s12 = int_to_ptr.vmem [resolvable:$true] %s25_s12 }
   0x4   :  { %s221_s13 = scalar_lea.vmem %s17_s10, 128  ;;  %p226_p1 = scmp.lt.s32.totalorder %s17_s10, %s17_s10 }
   0x5   :  { %p222_p0 = scmp.ne.s32.totalorder %s17_s10, %s221_s13  ;;  %p227_p2 = scmp.lt.s32.totalorder %s221_s13, %s221_s13 }
   0x7   :  { %p228_p3 = por %p227_p2, %p226_p1 }
   0x9   :  { %p229_p4 = pnand %p228_p3, %p222_p0 }
   0xb   :  { %232 = shalt.err (!%p229_p4)
}
   0xc   :  { %19 = dma.hbm_to_vmem [thread:$0]  %s310_s0, 128, %s17_s10, [#allocation3]  }
   0xd   :  { %s241_s16 = scalar_lea.vmem %s26_s12, 2048  ;;  %p246_p6 = scmp.lt.s32.totalorder %s26_s12, %s26_s12 }
   0xe   :  { %p242_p5 = scmp.ne.s32.totalorder %s26_s12, %s241_s16  ;;  %p247_p7 = scmp.lt.s32.totalorder %s241_s16, %s241_s16 }
  0x10   :  { %p248_p8 = por %p247_p7, %p246_p6 }
  0x12   :  { %p249_p9 = pnand %p248_p8, %p242_p5 }
  0x14   :  { %252 = shalt.err (!%p249_p9)
}
  0x15   :  { %s281_s17 = smov 128   ;;  %s282_s18 = smov 8  }
  0x16   :  { %31 = dma.hbm_to_vmem [thread:$0]  %s311_s1, 2048, %s26_s12, [#allocation6], %s281_s17, %s281_s17, %s282_s18  }
  0x17   :  { %273 = dma.done.wait [#allocation3], 128  }
  0x18   :  { %274 = vsyncadd [#allocation3], 4294967168 }
  0x19   :  { %275 = dma.done.wait [#allocation6], 2048  }
  0x1a   :  { %276 = vsyncadd [#allocation6], 4294965248  ;;  %v283_v0 = vmov 0.0   ;;  %vm284_vm0 = vmmov 0   ;;  %v64_v1 = vld [vmem:[#allocation5 + $0x78] sm:$0xff]  ;;  %v63_v2 = vld [vmem:[#allocation5 + $0x70] sm:$0xff] }
  0x1b   :  { %171 = vmatprep.subr.mxu0 %v283_v0  ;;  %203 = vmatprep.mubr.msk.f32.mxu0 %vm284_vm0, %v283_v0  ;;  %v62_v3 = vld [vmem:[#allocation5 + $0x68] sm:$0xff]  ;;  %v61_v4 = vld [vmem:[#allocation5 + $0x60] sm:$0xff]  ;;  %v60_v5 = vld [vmem:[#allocation5 + $0x58] sm:$0xff]  ;;  %s285_s0 = smov [#allocation7]  }
  0x1c   :  { %172 = vmatpush3.xpose.msra.mxu0 %v64_v1  ;;  %v59_v6 = vld [vmem:[#allocation5 + $0x50] sm:$0xff]  ;;  %v58_v7 = vld [vmem:[#allocation5 + $0x48] sm:$0xff]  ;;  %v57_v8 = vld [vmem:[#allocation5 + $0x40] sm:$0xff]  ;;  %s143_s1 = sshll.u32 %s285_s0, 4  ;;  %s144_s1 = int_to_ptr.vmem [resolvable:$true] %s143_s1 }
  0x1d   :  { %173 = vmatprep.subr.mxu0 %v283_v0  ;;  %v56_v9 = vld [vmem:[#allocation5 + $0x38] sm:$0xff]  ;;  %v55_v10 = vld [vmem:[#allocation5 + $0x30] sm:$0xff]  ;;  %v54_v11 = vld [vmem:[#allocation5 + $0x28] sm:$0xff]  ;;  %s253_s21 = scalar_lea.vmem %s144_s1, 128  ;;  %p258_p11 = scmp.lt.s32.totalorder %s144_s1, %s144_s1 }
  0x1e   :  { %v53_v12 = vld [vmem:[#allocation5 + $0x20] sm:$0xff]  ;;  %v52_v13 = vld [vmem:[#allocation5 + $0x18] sm:$0xff]  ;;  %v51_v14 = vld [vmem:[#allocation5 + $0x10] sm:$0xff]  ;;  %p254_p10 = scmp.ne.s32.totalorder %s144_s1, %s253_s21  ;;  %p259_p12 = scmp.lt.s32.totalorder %s253_s21, %s253_s21 }
  0x1f   :  { %v50_v15 = vld [vmem:[#allocation5 + $0x8] sm:$0xff]  ;;  %v49_v16 = vld [vmem:[#allocation5] sm:$0xff]  ;;  %v48_v17 = vld [vmem:[#allocation2] sm:$0xff] }
  0x20   :  { %174 = vmatpush3.xpose.msra.mxu0 %v63_v2  ;;  %p260_p13 = por %p259_p12, %p258_p11 }
  0x21   :  { %175 = vmatprep.subr.mxu0 %v283_v0 }
  0x22   :  { %p261_p0 = pnand %p260_p13, %p254_p10 }
  0x24   :  { %176 = vmatpush3.xpose.msra.mxu0 %v62_v3 }
  0x25   :  { %177 = vmatprep.subr.mxu0 %v283_v0 }
  0x28   :  { %178 = vmatpush3.xpose.msra.mxu0 %v61_v4 }
  0x29   :  { %179 = vmatprep.subr.mxu0 %v283_v0 }
  0x2c   :  { %180 = vmatpush3.xpose.msra.mxu0 %v60_v5 }
  0x2d   :  { %181 = vmatprep.subr.mxu0 %v283_v0 }
  0x30   :  { %182 = vmatpush3.xpose.msra.mxu0 %v59_v6 }
  0x31   :  { %183 = vmatprep.subr.mxu0 %v283_v0 }
  0x34   :  { %184 = vmatpush3.xpose.msra.mxu0 %v58_v7 }
  0x35   :  { %185 = vmatprep.subr.mxu0 %v283_v0 }
  0x38   :  { %186 = vmatpush3.xpose.msra.mxu0 %v57_v8 }
  0x39   :  { %187 = vmatprep.subr.mxu0 %v283_v0 }
  0x3c   :  { %188 = vmatpush3.xpose.msra.mxu0 %v56_v9 }
  0x3d   :  { %189 = vmatprep.subr.mxu0 %v283_v0 }
  0x40   :  { %190 = vmatpush3.xpose.msra.mxu0 %v55_v10 }
  0x41   :  { %191 = vmatprep.subr.mxu0 %v283_v0 }
  0x44   :  { %192 = vmatpush3.xpose.msra.mxu0 %v54_v11 }
  0x45   :  { %193 = vmatprep.subr.mxu0 %v283_v0 }
  0x48   :  { %194 = vmatpush3.xpose.msra.mxu0 %v53_v12 }
  0x49   :  { %195 = vmatprep.subr.mxu0 %v283_v0 }
  0x4c   :  { %196 = vmatpush3.xpose.msra.mxu0 %v52_v13 }
  0x4d   :  { %197 = vmatprep.subr.mxu0 %v283_v0 }
  0x50   :  { %198 = vmatpush3.xpose.msra.mxu0 %v51_v14 }
  0x51   :  { %199 = vmatprep.subr.mxu0 %v283_v0 }
  0x54   :  { %200 = vmatpush3.xpose.msra.mxu0 %v50_v15 }
  0x55   :  { %201 = vmatprep.subr.mxu0 %v283_v0 }
  0x58   :  { %202 = vmatpush3.xpose.msra.mxu0 %v49_v16 }
  0x5b   :  { %204 = vmatmul.mubr.f32.vlgmr.msra.gmra.mxu0 %v48_v17 }
 0x11b   :  { %v131_v18 = vpop.f32.mrf.mxu0 }
 0x11c   :  { %136 = vst [vmem:[#allocation7] sm:$0xff] %v131_v18 }
 0x11d   :  { %v205_v19 = vpop.f32.mrf.mxu0 }
 0x11e   :  { %264 = shalt.err (!%p261_p0)
}
 0x11f   :  { %146 = dma.vmem_to_hbm [thread:$0]  %s144_s1, 128, %s312_s2, [#allocation4]  }
 0x120   :  { %277 = dma.done.wait [#allocation4], 128  }
 0x121   :  { %278 = vsyncadd [#allocation4], 4294967168 }
 0x122   :  { %150 = vsyncpa [#allocation3], 1 }
 0x123   :  { %151 = vsyncpa [#allocation6], 1 }
 0x124   :  { %152 = vsyncpa [#allocation4], 1 }

</bundles_post_ra>
